<compile_context>
chip_gen: v5e
topology: v5e:2x2
jax: 0.10.0
libtpu: 0.0.40
codegen_flags: <defaults>
</compile_context>

<pallas_src>
import jax
import jax.numpy as jnp
from jax.experimental import pallas as pl
from jax.experimental.pallas import tpu as pltpu


# ----------------------------------------------------------------------------
# Fused kernel: conv3x3(+bias,ReLU) -> global-avg-pool -> LinearHead
# One grid step processes `block_n` images.
# ----------------------------------------------------------------------------
def fused_backbone_head_kernel(xp_ref, wconv_ref, bconv_ref, pool_ref,
                               whead_ref, bhead_ref, o_ref):
    # xp_ref:    (K_pad, B_blk*H*W)  bf16  im2col patches, channels-major, K zero-padded
    # wconv_ref: (Cout, K_pad)       bf16  conv weights, OIHW flattened, K zero-padded
    # bconv_ref: (Cout, 1)           f32   conv bias
    # pool_ref:  (B_blk*H*W, B_blk)  bf16  block-diagonal 1/(H*W) averaging matrix
    # whead_ref: (Cout, Demb_pad)    f32   head weights (torch Linear transposed, 128-lane padded)
    # bhead_ref: (1, Demb_pad)       f32   head bias (128-lane padded)
    # o_ref:     (B_blk, Demb_pad)   f32   embeddings (padded lanes sliced off in wrapper)
    acc = jnp.dot(wconv_ref[...], xp_ref[...],
                  preferred_element_type=jnp.float32)        # (Cout, B_blk*H*W), MXU, f32 acc
    acc = jnp.maximum(acc + bconv_ref[...], 0.0)             # bias + ReLU, f32 VPU
    # GAP on the MXU with bf16 operands (single-pass even on v5e); f32 accumulate.
    pooled = jnp.dot(acc.astype(jnp.bfloat16), pool_ref[...],
                     preferred_element_type=jnp.float32)     # (Cout, B_blk)
    # TODO(synk): lhs-contracting-dim-0 here may cost a tiny relayout of `pooled`
    # (32 x B_blk); revisit with pl.dot/trans once Cout/Demb are scaled up.
    out = jax.lax.dot_general(                               # (B_blk, Demb_pad) head matmul
        pooled, whead_ref[...],
        dimension_numbers=(((0,), (0,)), ((), ())),
        preferred_element_type=jnp.float32)
    o_ref[...] = (out + bhead_ref[...]).astype(o_ref.dtype)  # lane-dense (128-wide) store


# ----------------------------------------------------------------------------
# Wrapper: plain-JAX glue (padding, im2col, layout/dtype prep) + one pallas_call
# ----------------------------------------------------------------------------
def metric_model_forward(x, targets, params, block_n=None):
    """MetricModel.forward: embeddings = head(backbone(x), targets)."""
    # TODO(synk): targets are unused by LinearHead.forward (only margin-based
    # heads consume them); kept in the signature to match MetricModel.forward.
    del targets

    N, Cin, H, W = x.shape
    conv_w = params["conv_w"]              # (Cout, Cin, 3, 3)  OIHW (PyTorch)
    conv_b = params["conv_b"]              # (Cout,)
    head_w = params["head_w"]              # (Demb, Cout)       torch.nn.Linear layout
    head_b = params["head_b"]              # (Demb,)
    Cout = conv_w.shape[0]
    Demb = head_w.shape[0]
    HW = H * W

    # Batch blocking.  Single-TC v5e/v6e: one fat grid step beats several thin
    # ones (the grid is a sequential loop there).  The cap of 8 bounds the
    # per-step xp tile / pool_mat footprint for v7x's 64 MiB VMEM and still
    # gives >= 2 "parallel" steps for v7x megacore once N >= 16.
    if block_n is None:
        block_n = min(N, 8)
    n_pad = -(-N // block_n) * block_n
    if n_pad != N:
        x = jnp.pad(x, ((0, n_pad - N), (0, 0), (0, 0), (0, 0)))

    # ---- im2col (channels-major), done once in the wrapper ----
    # TODO(synk): at realistic backbone scales (224x224, Cin>=64) do NOT
    # materialize im2col in HBM (9x input traffic): DMA a halo'd row strip and
    # form the 9 taps in-kernel over a spatial "arbitrary" grid axis, with the
    # pooled result accumulated in VMEM scratch (pl.when init/finalize).
    K = 9 * Cin
    K_pad = -(-K // 16) * 16                                  # bf16 sublane granule
    xpad = jnp.pad(x, ((0, 0), (0, 0), (1, 1), (1, 1)))       # (n_pad, Cin, H+2, W+2)
    taps = [xpad[:, :, dy:dy + H, dx:dx + W]
            for dy in range(3) for dx in range(3)]
    patches = jnp.concatenate(taps, axis=1)                   # (n_pad, 9*Cin, H, W)
    patches = patches.transpose(1, 0, 2, 3).reshape(K, n_pad * HW)
    patches = jnp.pad(patches, ((0, K_pad - K), (0, 0))).astype(jnp.bfloat16)

    # conv weights OIHW -> (Cout, K_pad), tap order (dy, dx) matching im2col
    w_mat = conv_w.transpose(0, 2, 3, 1).reshape(Cout, K)
    w_mat = jnp.pad(w_mat, ((0, 0), (0, K_pad - K))).astype(jnp.bfloat16)
    b_conv = conv_b.reshape(Cout, 1).astype(jnp.float32)

    # Head padded to a multiple of 128 output lanes -> full-width epilogue
    # matmul and unmasked (lane-dense) output stores; sliced back below.
    Demb_pad = -(-Demb // 128) * 128
    w_head = jnp.pad(head_w.T.astype(jnp.float32),
                     ((0, 0), (0, Demb_pad - Demb)))           # (Cout, Demb_pad)
    b_head = jnp.pad(head_b.astype(jnp.float32),
                     (0, Demb_pad - Demb)).reshape(1, Demb_pad)

    # Block-diagonal averaging matrix (bf16): pool_mat[b*HW + j, b] = 1/(H*W).
    # TODO(synk): footprint is O(block_n^2 * HW); at large HW fold pooling into
    # a spatial-strip accumulator instead of a resident matrix.
    pool_mat = ((jnp.arange(block_n * HW)[:, None] // HW
                 == jnp.arange(block_n)[None, :]).astype(jnp.float32)
                / HW).astype(jnp.bfloat16)

    grid_n = n_pad // block_n
    flops = int(2 * Cout * K_pad * n_pad * HW                 # conv matmul
                + 2 * Cout * HW * block_n * n_pad             # pool matmul
                + 2 * n_pad * Cout * Demb_pad)                 # head matmul
    bytes_accessed = int(patches.size * 2 + w_mat.size * 2 + pool_mat.size * 2
                         + b_conv.size * 4 + w_head.size * 4 + b_head.size * 4
                         + n_pad * Demb_pad * 4)

    out = pl.pallas_call(
        fused_backbone_head_kernel,
        out_shape=jax.ShapeDtypeStruct((n_pad, Demb_pad), jnp.float32),
        grid=(grid_n,),
        in_specs=[
            pl.BlockSpec((K_pad, block_n * HW), lambda i: (0, i)),
            pl.BlockSpec((Cout, K_pad), lambda i: (0, 0)),
            pl.BlockSpec((Cout, 1), lambda i: (0, 0)),
            pl.BlockSpec((block_n * HW, block_n), lambda i: (0, 0)),
            pl.BlockSpec((Cout, Demb_pad), lambda i: (0, 0)),
            pl.BlockSpec((1, Demb_pad), lambda i: (0, 0)),
        ],
        out_specs=pl.BlockSpec((block_n, Demb_pad), lambda i: (i, 0)),
        compiler_params=pltpu.CompilerParams(
            dimension_semantics=("parallel",),
            vmem_limit_bytes=48 * 1024 * 1024),   # headroom, still < v7x's 64 MiB
        cost_estimate=pl.CostEstimate(flops=flops, transcendentals=0,
                                      bytes_accessed=bytes_accessed),
    )(patches, w_mat, b_conv, pool_mat, w_head, b_head)

    return out[:N, :Demb]


# ----------------------------------------------------------------------------
# Deterministic parameter init (PyTorch layouts) + example run
# ----------------------------------------------------------------------------
def init_params(key, cin=4, hidden=32, emb=16):
    k1, k2, k3, k4 = jax.random.split(key, 4)
    conv_w = jax.random.normal(k1, (hidden, cin, 3, 3), jnp.float32) * 0.1  # OIHW
    conv_b = jax.random.normal(k2, (hidden,), jnp.float32) * 0.01
    head_w = jax.random.normal(k3, (emb, hidden), jnp.float32) * 0.1        # (out, in)
    head_b = jax.random.normal(k4, (emb,), jnp.float32) * 0.01
    return {"conv_w": conv_w, "conv_b": conv_b,
            "head_w": head_w, "head_b": head_b}


if __name__ == "__main__":
    key = jax.random.PRNGKey(0)
    kx, kt, kp = jax.random.split(key, 3)

    N, C, H, W = 2, 4, 16, 16            # small NCHW input, PyTorch convention
    x = jax.random.normal(kx, (N, C, H, W), jnp.float32)
    targets = jax.random.randint(kt, (N,), 0, 10, jnp.int32)

    params = init_params(kp, cin=C, hidden=32, emb=16)

    out = metric_model_forward(x, targets, params)
    out = jax.block_until_ready(out)
    assert out.shape == (N, 16) and out.dtype == jnp.float32
    print("KERNEL_OK")
</pallas_src>

<mosaic_0001>
module attributes {stable_mosaic.version = 11 : i64} {
  func.func @fused_backbone_head_kernel(%arg0: i32, %arg1: memref<48x512xbf16, #tpu.memory_space<vmem>>, %arg2: memref<32x48xbf16, #tpu.memory_space<vmem>>, %arg3: memref<32x1xf32, #tpu.memory_space<vmem>>, %arg4: memref<512x2xbf16, #tpu.memory_space<vmem>>, %arg5: memref<32x128xf32, #tpu.memory_space<vmem>>, %arg6: memref<1x128xf32, #tpu.memory_space<vmem>>, %arg7: memref<2x128xf32, #tpu.memory_space<vmem>>) attributes {dimension_semantics = [#tpu.dimension_semantics<parallel>], iteration_bounds = array<i64: 1>, scalar_prefetch = 0 : i64, scratch_operands = 0 : i64, tpu.core_type = #tpu.core_type<tc>, window_params = [{transform_indices = @transform_0, window_bounds = array<i64: 48, 512>}, {pipeline_mode = #tpu.pipeline_mode<synchronous>, transform_indices = @transform_1, window_bounds = array<i64: 32, 48>}, {pipeline_mode = #tpu.pipeline_mode<synchronous>, transform_indices = @transform_2, window_bounds = array<i64: 32, 1>}, {pipeline_mode = #tpu.pipeline_mode<synchronous>, transform_indices = @transform_3, window_bounds = array<i64: 512, 2>}, {pipeline_mode = #tpu.pipeline_mode<synchronous>, transform_indices = @transform_4, window_bounds = array<i64: 32, 128>}, {pipeline_mode = #tpu.pipeline_mode<synchronous>, transform_indices = @transform_5, window_bounds = array<i64: 1, 128>}, {transform_indices = @transform_6, window_bounds = array<i64: 2, 128>}]} {
    %c0 = arith.constant 0 : index
    %c0_0 = arith.constant 0 : index
    %0 = vector.load %arg2[%c0, %c0_0] : memref<32x48xbf16, #tpu.memory_space<vmem>>, vector<32x48xbf16>
    %c0_1 = arith.constant 0 : index
    %c0_2 = arith.constant 0 : index
    %1 = vector.load %arg1[%c0_1, %c0_2] : memref<48x512xbf16, #tpu.memory_space<vmem>>, vector<48x512xbf16>
    %cst = arith.constant dense<0.000000e+00> : vector<32x512xf32>
    %2 = tpu.matmul %0, %1, %cst {dimension_numbers = #tpu.dot_dimension_numbers<[1], [0], [0], [1], [0, 0, 1, 1], [], []>} : vector<32x48xbf16>, vector<48x512xbf16>, vector<32x512xf32> -> vector<32x512xf32>
    %c0_3 = arith.constant 0 : index
    %c0_4 = arith.constant 0 : index
    %3 = vector.load %arg3[%c0_3, %c0_4] : memref<32x1xf32, #tpu.memory_space<vmem>>, vector<32x1xf32>
    %4 = vector.broadcast %3 : vector<32x1xf32> to vector<32x512xf32>
    %5 = arith.addf %2, %4 : vector<32x512xf32>
    %cst_5 = arith.constant 0.000000e+00 : f32
    %6 = vector.broadcast %cst_5 : f32 to vector<32x512xf32>
    %7 = arith.maximumf %5, %6 : vector<32x512xf32>
    %8 = arith.truncf %7 : vector<32x512xf32> to vector<32x512xbf16>
    %c0_6 = arith.constant 0 : index
    %c0_7 = arith.constant 0 : index
    %9 = vector.load %arg4[%c0_6, %c0_7] : memref<512x2xbf16, #tpu.memory_space<vmem>>, vector<512x2xbf16>
    %cst_8 = arith.constant dense<0.000000e+00> : vector<32x2xf32>
    %10 = tpu.matmul %8, %9, %cst_8 {dimension_numbers = #tpu.dot_dimension_numbers<[1], [0], [0], [1], [0, 0, 1, 1], [], []>} : vector<32x512xbf16>, vector<512x2xbf16>, vector<32x2xf32> -> vector<32x2xf32>
    %c0_9 = arith.constant 0 : index
    %c0_10 = arith.constant 0 : index
    %11 = vector.load %arg5[%c0_9, %c0_10] : memref<32x128xf32, #tpu.memory_space<vmem>>, vector<32x128xf32>
    %cst_11 = arith.constant dense<0.000000e+00> : vector<2x128xf32>
    %12 = tpu.matmul %10, %11, %cst_11 {dimension_numbers = #tpu.dot_dimension_numbers<[0], [0], [1], [1], [0, 1, 1, 1], [], []>} : vector<32x2xf32>, vector<32x128xf32>, vector<2x128xf32> -> vector<2x128xf32>
    %c0_12 = arith.constant 0 : index
    %c0_13 = arith.constant 0 : index
    %13 = vector.load %arg6[%c0_12, %c0_13] : memref<1x128xf32, #tpu.memory_space<vmem>>, vector<1x128xf32>
    %14 = vector.broadcast %13 : vector<1x128xf32> to vector<2x128xf32>
    %15 = arith.addf %12, %14 : vector<2x128xf32>
    %c0_14 = arith.constant 0 : index
    %c0_15 = arith.constant 0 : index
    %16 = vector.load %arg7[%c0_14, %c0_15] : memref<2x128xf32, #tpu.memory_space<vmem>>, vector<2x128xf32>
    tpu.vector_store %arg7[%c0_14, %c0_15], %15 {strides = array<i32>} : memref<2x128xf32, #tpu.memory_space<vmem>>, vector<2x128xf32>,
    return
  }
  func.func @transform_0(%arg0: i32) -> (i32, i32) {
    %c0_i32 = arith.constant 0 : i32
    %c0_i32_0 = arith.constant 0 : i32
    return %c0_i32, %arg0 : i32, i32
  }
  func.func @transform_1(%arg0: i32) -> (i32, i32) {
    %c0_i32 = arith.constant 0 : i32
    %c0_i32_0 = arith.constant 0 : i32
    %c0_i32_1 = arith.constant 0 : i32
    return %c0_i32, %c0_i32_0 : i32, i32
  }
  func.func @transform_2(%arg0: i32) -> (i32, i32) {
    %c0_i32 = arith.constant 0 : i32
    %c0_i32_0 = arith.constant 0 : i32
    %c0_i32_1 = arith.constant 0 : i32
    return %c0_i32, %c0_i32_0 : i32, i32
  }
  func.func @transform_3(%arg0: i32) -> (i32, i32) {
    %c0_i32 = arith.constant 0 : i32
    %c0_i32_0 = arith.constant 0 : i32
    %c0_i32_1 = arith.constant 0 : i32
    return %c0_i32, %c0_i32_0 : i32, i32
  }
  func.func @transform_4(%arg0: i32) -> (i32, i32) {
    %c0_i32 = arith.constant 0 : i32
    %c0_i32_0 = arith.constant 0 : i32
    %c0_i32_1 = arith.constant 0 : i32
    return %c0_i32, %c0_i32_0 : i32, i32
  }
  func.func @transform_5(%arg0: i32) -> (i32, i32) {
    %c0_i32 = arith.constant 0 : i32
    %c0_i32_0 = arith.constant 0 : i32
    %c0_i32_1 = arith.constant 0 : i32
    return %c0_i32, %c0_i32_0 : i32, i32
  }
  func.func @transform_6(%arg0: i32) -> (i32, i32) {
    %c0_i32 = arith.constant 0 : i32
    %c0_i32_0 = arith.constant 0 : i32
    return %arg0, %c0_i32 : i32, i32
  }
}

</mosaic_0001>

<bundles_post_ra>
// kernel: tpu_custom_call.1
= control target key start
LH: loop header
LB: loop body
LE: loop exit
PB: predicated region body
PF: predicated region fallthrough
CT: control target
= control target key end

     0   :  { %v926_v37 = vmov 0   ;;  %vm135_vm0 = vcmask 392192   ;;  %s1175_s0 = inlined_call_operand.vmem [shape: bf16[48,512], index: 0, kind: input, shape index: {}]   ;;  %s1176_s1 = inlined_call_operand.vmem [shape: bf16[32,48], index: 1, kind: input, shape index: {}]   ;;  %s1177_s2 = inlined_call_operand.vmem [shape: f32[32,1], index: 2, kind: input, shape index: {}]   ;;  %s1178_s3 = inlined_call_operand.vmem [shape: bf16[512,2], index: 3, kind: input, shape index: {}]   ;;  %s1179_s4 = inlined_call_operand.vmem [shape: f32[32,128], index: 4, kind: input, shape index: {}]   ;;  %s1180_s5 = inlined_call_operand.vmem [shape: f32[1,128], index: 5, kind: input, shape index: {}]   ;;  %s1181_s6 = inlined_call_operand.hbm [shape: f32[2,128], index: 6, kind: output, shape index: {}]  }
   0x1   :  { %v697_v0 = vld [vmem:[%s1175_s0 + $0x40] sm:$0xf]  ;;  %v860_v1 = vld [vmem:[%s1175_s0 + $0x4c] sm:$0xf0]  ;;  %v858_v2 = vld [vmem:[%s1175_s0 + $0x44] sm:$0xf]  ;;  %897 = vset.pattern.permute.xlu0 %v926_v37  ;;  %898 = vset.pattern.permute.xlu1 %v926_v37 }
   0x2   :  { %v698_v3 = vor.u32 %v860_v1, %v697_v0  ;;  %v699_v4 = vld [vmem:[%s1175_s0 + $0x50] sm:$0xf0]  ;;  %v705_v5 = vld [vmem:[%s1175_s0 + $0x48] sm:$0xf]  ;;  %v861_v6 = vld [vmem:[%s1175_s0 + $0x54] sm:$0xf0] }
   0x3   :  { %v702_v7 = vor.u32 %v858_v2, %v699_v4  ;;  %v706_v8 = vor.u32 %v861_v6, %v705_v5  ;;  %v859_v9 = vld [vmem:[%s1175_s0 + $0x4c] sm:$0xf]  ;;  %v707_v10 = vld [vmem:[%s1175_s0 + $0x58] sm:$0xf0]  ;;  %v681_v11 = vld [vmem:[%s1175_s0 + $0x20] sm:$0xf] }
   0x4   :  { %147 = vmatpush.bf16.msra.mxu0 %v698_v3  ;;  %v710_v12 = vor.u32 %v859_v9, %v707_v10  ;;  %v856_v13 = vld [vmem:[%s1175_s0 + $0x2c] sm:$0xf0]  ;;  %v854_v14 = vld [vmem:[%s1175_s0 + $0x24] sm:$0xf]  ;;  %v683_v15 = vld [vmem:[%s1175_s0 + $0x30] sm:$0xf0] }
   0x5   :  { %166 = vmatpush.bf16.msra.mxu1 %v702_v7  ;;  %185 = vmatpush.bf16.msra.mxu2 %v706_v8  ;;  %v682_v16 = vor.u32 %v856_v13, %v681_v11  ;;  %v686_v17 = vor.u32 %v854_v14, %v683_v15  ;;  %v689_v18 = vld [vmem:[%s1175_s0 + $0x28] sm:$0xf]  ;;  %v857_v19 = vld [vmem:[%s1175_s0 + $0x34] sm:$0xf0]  ;;  %v855_v20 = vld [vmem:[%s1175_s0 + $0x2c] sm:$0xf] }
   0x6   :  { %204 = vmatpush.bf16.msra.mxu3 %v710_v12  ;;  %v690_v21 = vor.u32 %v857_v19, %v689_v18  ;;  %v691_v22 = vld [vmem:[%s1175_s0 + $0x38] sm:$0xf0]  ;;  %v665_v23 = vld [vmem:[%s1175_s0] sm:$0xf]  ;;  %v852_v24 = vld [vmem:[%s1175_s0 + $0xc] sm:$0xf0] }
   0x7   :  { %v694_v25 = vor.u32 %v855_v20, %v691_v22  ;;  %v850_v26 = vld [vmem:[%s1175_s0 + $0x4] sm:$0xf]  ;;  %v667_v27 = vld [vmem:[%s1175_s0 + $0x10] sm:$0xf0]  ;;  %v673_v28 = vld [vmem:[%s1175_s0 + $0x8] sm:$0xf]  ;;  %v666_v29 = vor.u32 %v852_v24, %v665_v23 }
   0x8   :  { %148 = vmatpush.bf16.msra.mxu0 %v682_v16  ;;  %v853_v30 = vld [vmem:[%s1175_s0 + $0x14] sm:$0xf0]  ;;  %v851_v31 = vld [vmem:[%s1175_s0 + $0xc] sm:$0xf]  ;;  %v675_v32 = vld [vmem:[%s1175_s0 + $0x18] sm:$0xf0]  ;;  %v670_v33 = vor.u32 %v850_v26, %v667_v27 }
   0x9   :  { %167 = vmatpush.bf16.msra.mxu1 %v686_v17  ;;  %186 = vmatpush.bf16.msra.mxu2 %v690_v21  ;;  %v674_v34 = vor.u32 %v853_v30, %v673_v28  ;;  %v41_v35 = vld [vmem:[%s1177_s2] sm:$0xff]  ;;  %v678_v36 = vor.u32 %v851_v31, %v675_v32  ;;  %v43_v38 = vld [vmem:[%s1177_s2 + $0x10] sm:$0xff]  ;;  %v869_v40 = vld [vmem:[%s1178_s3 + $0x38] sm:$0xff] }
   0xa   :  { %205 = vmatpush.bf16.msra.mxu3 %v694_v25  ;;  %v848_v39 = vld [vmem:[%s1176_s1] sm:$0xff]  ;;  %47 = vperm.xlu0 %897, %v41_v35   ;;  %v877_v41 = vld [vmem:[%s1178_s3 + $0x78] sm:$0xff]  ;;  %v868_v43 = vld [vmem:[%s1178_s3 + $0x30] sm:$0xff] }
   0xb   :  { %57 = vperm.xlu1 %898, %v43_v38   ;;  %v885_v42 = vld [vmem:[%s1178_s3 + $0xb8] sm:$0xff]  ;;  %v876_v45 = vld [vmem:[%s1178_s3 + $0x70] sm:$0xff] }
   0xc   :  { %149 = vmatpush.bf16.msra.mxu0 %v666_v29  ;;  %v893_v44 = vld [vmem:[%s1178_s3 + $0xf8] sm:$0xff] }
   0xd   :  { %168 = vmatpush.bf16.msra.mxu1 %v670_v33  ;;  %187 = vmatpush.bf16.msra.mxu2 %v674_v34 }
   0xe   :  { %206 = vmatpush.bf16.msra.mxu3 %v678_v36 }
   0xf   :  { %711 = vmatmul.msk.bf16.vlgmr.msra.gmra.mxu0 %vm135_vm0, %v848_v39 }
  0x10   :  { %498 = vmatpush.bf16.msrb.mxu0 %v869_v40 }
  0x11   :  { %517 = vmatpush.bf16.msrb.mxu1 %v877_v41 }
  0x12   :  { %11 = vsyncpa [#allocation3], 0  ;;  %713 = vmatmul.msk.bf16.vlgmr.msra.gmra.mxu1 %vm135_vm0, %v848_v39  ;;  %715 = vmatmul.msk.bf16.vlgmr.msra.gmra.mxu2 %vm135_vm0, %v848_v39  ;;  %v42_v46 = vld [vmem:[%s1177_s2 + $0x8] sm:$0xff]  ;;  %v44_v47 = vld [vmem:[%s1177_s2 + $0x18] sm:$0xff]  ;;  %vm614_vm1 = vcmask 261120   ;;  %s927_s2 = smov [#allocation2]  }
  0x13   :  { %717 = vmatmul.msk.bf16.vlgmr.msra.gmra.mxu3 %vm135_vm0, %v848_v39  ;;  %536 = vmatpush.bf16.msrb.mxu2 %v885_v42  ;;  %v884_v48 = vld [vmem:[%s1178_s3 + $0xb0] sm:$0xff]  ;;  %v867_v49 = vld [vmem:[%s1178_s3 + $0x28] sm:$0xff]  ;;  %v866_v53 = vld [vmem:[%s1178_s3 + $0x20] sm:$0xff]  ;;  %s644_s26 = sshll.u32 %s927_s2, 4  ;;  %s646_s28 = sshll.u32 %s1181_s6, 4  ;;  %s645_s26 = int_to_ptr.vmem [resolvable:$true] %s644_s26  ;;  %s647_s28 = int_to_ptr.hbm [resolvable:$true] %s646_s28 }
  0x14   :  { %499 = vmatpush.bf16.msrb.mxu0 %v868_v43  ;;  %555 = vmatpush.bf16.msrb.mxu3 %v893_v44  ;;  %v892_v50 = vld [vmem:[%s1178_s3 + $0xf0] sm:$0xff]  ;;  %v875_v51 = vld [vmem:[%s1178_s3 + $0x68] sm:$0xff]  ;;  %v874_v54 = vld [vmem:[%s1178_s3 + $0x60] sm:$0xff] }
  0x15   :  { %52 = vperm.xlu0 %897, %v42_v46   ;;  %518 = vmatpush.bf16.msrb.mxu1 %v876_v45  ;;  %v883_v52 = vld [vmem:[%s1178_s3 + $0xa8] sm:$0xff]  ;;  %v865_v57 = vld [vmem:[%s1178_s3 + $0x18] sm:$0xff]  ;;  %v882_v59 = vld [vmem:[%s1178_s3 + $0xa0] sm:$0xff] }
  0x16   :  { %62 = vperm.xlu1 %898, %v44_v47   ;;  %v849_v55 = vld [vmem:[%s1176_s1 + $0x8] sm:$0xff]  ;;  %v873_v58 = vld [vmem:[%s1178_s3 + $0x58] sm:$0xff]  ;;  %v890_v60 = vld [vmem:[%s1178_s3 + $0xe0] sm:$0xff] }
  0x17   :  { %537 = vmatpush.bf16.msrb.mxu2 %v884_v48  ;;  %v891_v56 = vld [vmem:[%s1178_s3 + $0xe8] sm:$0xff]  ;;  %v864_v61 = vld [vmem:[%s1178_s3 + $0x10] sm:$0xff]  ;;  %v881_v63 = vld [vmem:[%s1178_s3 + $0x98] sm:$0xff] }
  0x18   :  { %500 = vmatpush.bf16.msrb.mxu0 %v867_v49  ;;  %556 = vmatpush.bf16.msrb.mxu3 %v892_v50  ;;  %v872_v62 = vld [vmem:[%s1178_s3 + $0x50] sm:$0xff]  ;;  %v889_v0 = vld [vmem:[%s1178_s3 + $0xd8] sm:$0xff]  ;;  %v863_v1 = vld [vmem:[%s1178_s3 + $0x8] sm:$0xff] }
  0x19   :  { %519 = vmatpush.bf16.msrb.mxu1 %v875_v51  ;;  %v871_v2 = vld [vmem:[%s1178_s3 + $0x48] sm:$0xff]  ;;  %v880_v3 = vld [vmem:[%s1178_s3 + $0x90] sm:$0xff]  ;;  %v862_v5 = vld [vmem:[%s1178_s3] sm:$0xff] }
  0x1a   :  { %v888_v4 = vld [vmem:[%s1178_s3 + $0xd0] sm:$0xff]  ;;  %v870_v6 = vld [vmem:[%s1178_s3 + $0x40] sm:$0xff]  ;;  %v879_v7 = vld [vmem:[%s1178_s3 + $0x88] sm:$0xff] }
  0x1b   :  { %538 = vmatpush.bf16.msrb.mxu2 %v883_v52  ;;  %v887_v8 = vld [vmem:[%s1178_s3 + $0xc8] sm:$0xff]  ;;  %v878_v9 = vld [vmem:[%s1178_s3 + $0x80] sm:$0xff] }
  0x1c   :  { %501 = vmatpush.bf16.msrb.mxu0 %v866_v53  ;;  %557 = vmatpush.bf16.msrb.mxu3 %v891_v56  ;;  %v886_v10 = vld [vmem:[%s1178_s3 + $0xc0] sm:$0xff] }
  0x1d   :  { %520 = vmatpush.bf16.msrb.mxu1 %v874_v54 }
  0x1f   :  { %712 = vmatmul.msk.bf16.gmra.mxu0 %vm135_vm0, %v849_v55  ;;  %539 = vmatpush.bf16.msrb.mxu2 %v882_v59 }
  0x20   :  { %502 = vmatpush.bf16.msrb.mxu0 %v865_v57  ;;  %558 = vmatpush.bf16.msrb.mxu3 %v890_v60 }
  0x21   :  { %521 = vmatpush.bf16.msrb.mxu1 %v873_v58 }
  0x22   :  { %714 = vmatmul.msk.bf16.gmra.mxu1 %vm135_vm0, %v849_v55  ;;  %716 = vmatmul.msk.bf16.gmra.mxu2 %vm135_vm0, %v849_v55 }
  0x23   :  { %718 = vmatmul.msk.bf16.gmra.mxu3 %vm135_vm0, %v849_v55  ;;  %540 = vmatpush.bf16.msrb.mxu2 %v881_v63 }
  0x24   :  { %503 = vmatpush.bf16.msrb.mxu0 %v864_v61  ;;  %559 = vmatpush.bf16.msrb.mxu3 %v889_v0 }
  0x25   :  { %522 = vmatpush.bf16.msrb.mxu1 %v872_v62 }
  0x27   :  { %541 = vmatpush.bf16.msrb.mxu2 %v880_v3 }
  0x28   :  { %504 = vmatpush.bf16.msrb.mxu0 %v863_v1  ;;  %560 = vmatpush.bf16.msrb.mxu3 %v888_v4 }
  0x29   :  { %523 = vmatpush.bf16.msrb.mxu1 %v871_v2 }
  0x2b   :  { %542 = vmatpush.bf16.msrb.mxu2 %v879_v7 }
  0x2c   :  { %505 = vmatpush.bf16.msrb.mxu0 %v862_v5  ;;  %561 = vmatpush.bf16.msrb.mxu3 %v887_v8 }
  0x2d   :  { %524 = vmatpush.bf16.msrb.mxu1 %v870_v6 }
  0x2f   :  { %543 = vmatpush.bf16.msrb.mxu2 %v878_v9  ;;  %v577_v9 = vld [vmem:[%s1179_s4 + $0x18] sm:$0xff] }
  0x30   :  { %562 = vmatpush.bf16.msrb.mxu3 %v886_v10  ;;  %v576_v10 = vld [vmem:[%s1179_s4 + $0x10] sm:$0xff]  ;;  %630 = vmatpush.msra.mxu0 %v577_v9 }
  0x32   :  { %631 = vmatpush.msra.mxu0 %v576_v10 }
  0x7c   :  { %v48_v11 = vpop.permute.xlu0 %47 }
  0x7d   :  { %v58_v28 = vpop.permute.xlu1 %57 }
  0x87   :  { %v53_v15 = vpop.permute.xlu0 %52 }
  0x88   :  { %v63_v45 = vpop.permute.xlu1 %62 }
  0x8c   :  { %v151_v12 = vpop.f32.mrf.mxu0 }
  0x8d   :  { %v152_v14 = vadd.f32 %v151_v12, %v48_v11 }
  0x8f   :  { %v170_v13 = vpop.f32.mrf.mxu1  ;;  %v218_v23 = vmax.f32 %v152_v14, 0.0 }
  0x90   :  { %v171_v17 = vadd.f32 %v170_v13, %v48_v11  ;;  %v575_v13 = vld [vmem:[%s1179_s4 + $0x8] sm:$0xff] }
  0x91   :  { %632 = vmatpush.msra.mxu0 %v575_v13 }
  0x92   :  { %v219_v25 = vmax.f32 %v171_v17, 0.0 }
  0x94   :  { %v153_v19 = vpop.f32.mrf.mxu0 }
  0x95   :  { %v189_v16 = vpop.f32.mrf.mxu2  ;;  %v154_v20 = vadd.f32 %v153_v19, %v53_v15 }
  0x96   :  { %v208_v18 = vpop.f32.mrf.mxu3  ;;  %v190_v29 = vadd.f32 %v189_v16, %v48_v11 }
  0x97   :  { %v172_v21 = vpop.f32.mrf.mxu1  ;;  %v222_v24 = vmax.f32 %v154_v20, 0.0  ;;  %v209_v31 = vadd.f32 %v208_v18, %v48_v11  ;;  %v574_v18 = vld [vmem:[%s1179_s4] sm:$0xff] }
  0x98   :  { %v173_v22 = vadd.f32 %v172_v21, %v53_v15  ;;  %v220_v38 = vmax.f32 %v190_v29, 0.0  ;;  %633 = vmatpush.msra.mxu0 %v574_v18 }
  0x99   :  { %v234_v27 = vpack.c.bf16 %v222_v24, %v218_v23  ;;  %v221_v40 = vmax.f32 %v209_v31, 0.0 }
  0x9a   :  { %v223_v26 = vmax.f32 %v173_v22, 0.0 }
  0x9b   :  { %506 = vmatmul.bf16.vlgmr.msrb.gmra.mxu0 %v234_v27 }
  0x9c   :  { %v235_v30 = vpack.c.bf16 %v223_v26, %v219_v25  ;;  %v156_v35 = vpop.f32.mrf.mxu0 }
  0x9d   :  { %v191_v32 = vpop.f32.mrf.mxu2  ;;  %v157_v44 = vadd.f32 %v156_v35, %v58_v28 }
  0x9e   :  { %v192_v33 = vadd.f32 %v191_v32, %v53_v15  ;;  %v210_v34 = vpop.f32.mrf.mxu3  ;;  %525 = vmatmul.bf16.vlgmr.msrb.gmra.mxu1 %v235_v30 }
  0x9f   :  { %v211_v36 = vadd.f32 %v210_v34, %v53_v15  ;;  %v175_v37 = vpop.f32.mrf.mxu1  ;;  %v226_v53 = vmax.f32 %v157_v44, 0.0 }
  0xa0   :  { %v224_v39 = vmax.f32 %v192_v33, 0.0  ;;  %v176_v47 = vadd.f32 %v175_v37, %v58_v28 }
  0xa1   :  { %v225_v41 = vmax.f32 %v211_v36, 0.0 }
  0xa2   :  { %v236_v42 = vpack.c.bf16 %v224_v39, %v220_v38  ;;  %v227_v55 = vmax.f32 %v176_v47, 0.0 }
  0xa3   :  { %v237_v43 = vpack.c.bf16 %v225_v41, %v221_v40  ;;  %v899_v40 = vld [vmem:[%s1180_s5] ss:$0 sm:$0xff] }
  0xa4   :  { %544 = vmatmul.bf16.vlgmr.msrb.gmra.mxu2 %v236_v42  ;;  %v158_v49 = vpop.f32.mrf.mxu0 }
  0xa5   :  { %563 = vmatmul.bf16.vlgmr.msrb.gmra.mxu3 %v237_v43  ;;  %v194_v46 = vpop.f32.mrf.mxu2  ;;  %v159_v50 = vadd.f32 %v158_v49, %v63_v45 }
  0xa6   :  { %v213_v48 = vpop.f32.mrf.mxu3  ;;  %v195_v58 = vadd.f32 %v194_v46, %v58_v28 }
  0xa7   :  { %v177_v51 = vpop.f32.mrf.mxu1  ;;  %v230_v54 = vmax.f32 %v159_v50, 0.0  ;;  %v214_v60 = vadd.f32 %v213_v48, %v58_v28 }
  0xa8   :  { %v178_v52 = vadd.f32 %v177_v51, %v63_v45  ;;  %v228_v1 = vmax.f32 %v195_v58, 0.0 }
  0xa9   :  { %v238_v57 = vpack.c.bf16 %v230_v54, %v226_v53  ;;  %v229_v3 = vmax.f32 %v214_v60, 0.0 }
  0xaa   :  { %v231_v56 = vmax.f32 %v178_v52, 0.0 }
  0xab   :  { %511 = vmatmul.bf16.gmra.mxu0 %v238_v57 }
  0xac   :  { %v239_v59 = vpack.c.bf16 %v231_v56, %v227_v55 }
  0xad   :  { %v196_v61 = vpop.f32.mrf.mxu2 }
  0xae   :  { %v197_v62 = vadd.f32 %v196_v61, %v63_v45  ;;  %v215_v63 = vpop.f32.mrf.mxu3  ;;  %530 = vmatmul.bf16.gmra.mxu1 %v239_v59 }
  0xaf   :  { %v216_v0 = vadd.f32 %v215_v63, %v63_v45 }
  0xb0   :  { %v232_v2 = vmax.f32 %v197_v62, 0.0 }
  0xb1   :  { %v233_v4 = vmax.f32 %v216_v0, 0.0 }
  0xb2   :  { %v240_v5 = vpack.c.bf16 %v232_v2, %v228_v1 }
  0xb3   :  { %v241_v6 = vpack.c.bf16 %v233_v4, %v229_v3 }
  0xb4   :  { %549 = vmatmul.bf16.gmra.mxu2 %v240_v5 }
  0xb5   :  { %568 = vmatmul.bf16.gmra.mxu3 %v241_v6 }
 0x118   :  { %v507_v7 = vpop.f32.mrf.mxu0 }
 0x11b   :  { %v526_v8 = vpop.f32.mrf.mxu1 }
 0x11c   :  { %v527_v11 = vadd.f32 %v526_v8, %v507_v7 }
 0x120   :  { %v509_v12 = vpop.f32.mrf.mxu0 }
 0x123   :  { %v528_v14 = vpop.f32.mrf.mxu1 }
 0x124   :  { %v529_v20 = vadd.f32 %v528_v14, %v509_v12 }
 0x127   :  { %v545_v15 = vpop.f32.mrf.mxu2 }
 0x128   :  { %v546_v16 = vadd.f32 %v545_v15, %v527_v11  ;;  %v564_v17 = vpop.f32.mrf.mxu3  ;;  %v512_v24 = vpop.f32.mrf.mxu0 }
 0x12a   :  { %v565_v19 = vadd.f32 %v564_v17, %v546_v16 }
 0x12b   :  { %v531_v25 = vpop.f32.mrf.mxu1 }
 0x12c   :  { %582 = vxpose.xlu2.b32.start [1/4] (short) (narrow) %v565_v19, 8  ;;  %v532_v27 = vadd.f32 %v531_v25, %v512_v24 }
 0x12f   :  { %v547_v21 = vpop.f32.mrf.mxu2 }
 0x130   :  { %v548_v22 = vadd.f32 %v547_v21, %v529_v20  ;;  %v566_v23 = vpop.f32.mrf.mxu3  ;;  %v514_v32 = vpop.f32.mrf.mxu0 }
 0x132   :  { %v567_v26 = vadd.f32 %v566_v23, %v548_v22 }
 0x133   :  { %v533_v33 = vpop.f32.mrf.mxu1 }
 0x134   :  { %583 = vxpose.xlu2.b32.cont [2/4] (short) (narrow) %v567_v26, 8  ;;  %v534_v34 = vadd.f32 %v533_v33, %v514_v32 }
 0x137   :  { %v550_v28 = vpop.f32.mrf.mxu2 }
 0x138   :  { %v551_v29 = vadd.f32 %v550_v28, %v532_v27  ;;  %v569_v30 = vpop.f32.mrf.mxu3 }
 0x13a   :  { %v570_v31 = vadd.f32 %v569_v30, %v551_v29 }
 0x13c   :  { %584 = vxpose.xlu2.b32.cont [3/4] (short) (narrow) %v570_v31, 8 }
 0x13f   :  { %v552_v35 = vpop.f32.mrf.mxu2 }
 0x140   :  { %v553_v36 = vadd.f32 %v552_v35, %v534_v34  ;;  %v571_v37 = vpop.f32.mrf.mxu3 }
 0x142   :  { %v572_v38 = vadd.f32 %v571_v37, %v553_v36 }
 0x144   :  { %585 = vxpose.xlu2.b32.end [4/4] (short) (narrow) %v572_v38, 8 }
 0x1c5   :  { %v598_v39 = vpop.trf.xlu2 }
 0x1c6   :  { %847 = vmatmul.msk.f32.vlgmr.msra.gmra.mxu0 %vm614_vm1, %v598_v39 }
 0x243   :  { %v635_v41 = vpop.f32.mrf.mxu0 }
 0x244   :  { %v636_v42 = vadd.f32 %v899_v40, %v635_v41 }
 0x246   :  { %638 = vst [vmem:[#allocation2] sm:$0x3] %v636_v42 }
 0x247   :  { %649 = dma.vmem_to_hbm [thread:$0]  %s645_s26, 32, %s647_s28, [#allocation3]  }
 0x248   :  { %924 = dma.done.wait [#allocation3], 32  }
 0x249   :  { %925 = vsyncadd [#allocation3], 4294967264 }
 0x24a   :  { %654 = vsyncpa [#allocation3], 1 }

</bundles_post_ra>
